<compile_context>
chip_gen: v5e
topology: v5e:2x2
jax: 0.10.0
libtpu: 0.0.40
codegen_flags: <defaults>
</compile_context>

<pallas_src>
import jax
import jax.numpy as jnp
from jax.experimental import pallas as pl
from jax.experimental.pallas import tpu as pltpu

KH, KW = 3, 3
LANE = 128
SUBLANE = 8


def _round_up(x, m):
    return ((x + m - 1) // m) * m


def _dw_conv_tanh_kernel(x_ref, w_ref, o_ref):
    # x_ref: (H_p, W_p, LB)   w_ref: (KH, KW, LB)   o_ref: (th_o, Wo_p, LB)
    th_o, wo_p, _ = o_ref.shape
    row0 = pl.program_id(1) * th_o          # first output row handled by this step

    # Weights are tiny: one load, then hoist the per-kw (KH,1,LB) views out of the
    # row loop (JAX does not CSE broadcasts inside loops).
    w_all = w_ref[...].astype(jnp.float32)                       # (KH, KW, LB)
    w_taps = [w_all[:, kw, :][:, None, :] for kw in range(KW)]   # 3 x (KH, 1, LB)

    def row_body(i, carry):
        g = row0 + i                         # top input row feeding this output row
        acc = None
        for kw in range(KW):
            # One W-shifted (KH, Wo_p, LB) slab per kw, read straight from the ref
            # and reused for all KH taps.
            slab = x_ref[pl.ds(g, KH), pl.ds(kw, wo_p), :].astype(jnp.float32)
            part = jnp.sum(slab * w_taps[kw], axis=0)            # (Wo_p, LB)
            acc = part if acc is None else acc + part
        # tanh lands on the EUP; store is a full lane-dense, sublane-aligned tile.
        o_ref[pl.ds(i, 1)] = jnp.tanh(acc)[None].astype(o_ref.dtype)
        return carry

    jax.lax.fori_loop(0, th_o, row_body, 0, unroll=True)


def depthwise_conv_tanh(x, w):
    """x: (N, C, H, W), w: (C, KH, KW). stride=1, padding=0, groups=C, no bias."""
    N, C, H, W = x.shape
    Ho, Wo = H - (KH - 1), W - (KW - 1)
    NC = N * C

    # Lane packing: N*C on lanes, padded to a 128 multiple.
    L = _round_up(NC, LANE)
    # Sublane alignment: pad output width to a multiple of 8 (unmasked stores).
    Wo_p = _round_up(Wo, SUBLANE)
    W_p = Wo_p + (KW - 1)
    # H tiling of the output; the input slab stays resident per lane tile.
    th_o = min(8, Ho)
    Ho_p = _round_up(Ho, th_o)
    H_p = Ho_p + (KH - 1)
    num_h = Ho_p // th_o

    itemsize = jnp.dtype(x.dtype).itemsize
    # Lane tile: biggest of {512,256,128} dividing L whose resident input slab stays
    # comfortably inside v7x's 64 MiB VMEM.
    lane_block = LANE
    for cand in (512, 256, 128):
        if L % cand == 0 and H_p * W_p * cand * itemsize <= 8 * 1024 * 1024:
            lane_block = cand
            break
    num_l = L // lane_block

    # Pack + pad: one transpose + one pad per operand.
    x_p = jnp.transpose(x, (2, 3, 0, 1)).reshape(H, W, NC)
    x_p = jnp.pad(x_p, ((0, H_p - H), (0, W_p - W), (0, L - NC)))
    w_p = jnp.broadcast_to(
        jnp.transpose(w, (1, 2, 0))[:, :, None, :], (KH, KW, N, C)
    ).reshape(KH, KW, NC)
    w_p = jnp.pad(w_p, ((0, 0), (0, 0), (0, L - NC))).astype(x.dtype)

    # Explicit VMEM budget (re-derived for the tile sizes; capped below v7x's 64 MiB).
    in_block = H_p * W_p * lane_block
    out_block = th_o * Wo_p * lane_block
    w_block = KH * KW * lane_block
    vmem_est = 2 * (in_block + out_block + w_block) * max(itemsize, 4)
    vmem_limit = int(min(max(4 * vmem_est, 16 * 1024 * 1024), 48 * 1024 * 1024))

    cost = pl.CostEstimate(
        flops=2 * KH * KW * N * C * Ho * Wo,
        transcendentals=N * C * Ho * Wo,
        bytes_accessed=itemsize * (N * C * H * W + N * C * Ho * Wo + C * KH * KW),
    )

    out_p = pl.pallas_call(
        _dw_conv_tanh_kernel,
        out_shape=jax.ShapeDtypeStruct((Ho_p, Wo_p, L), x.dtype),
        grid_spec=pltpu.PrefetchScalarGridSpec(
            num_scalar_prefetch=0,
            grid=(num_l, num_h),
            in_specs=[
                # Full (padded-H) input slab per lane tile; constant in h -> fetched
                # once per lane tile and kept VMEM-resident across the h steps.
                pl.BlockSpec((H_p, W_p, lane_block), lambda l, h: (0, 0, l)),
                # Weights: VMEM-resident, re-fetched only when the lane tile changes.
                pl.BlockSpec((KH, KW, lane_block), lambda l, h: (0, 0, l)),
            ],
            out_specs=pl.BlockSpec((th_o, Wo_p, lane_block), lambda l, h: (h, 0, l)),
        ),
        compiler_params=pltpu.CompilerParams(
            dimension_semantics=("parallel", "parallel"),
            vmem_limit_bytes=vmem_limit,
        ),
        cost_estimate=cost,
    )(x_p, w_p)

    # Crop padding, unpack lanes back to (N, C), restore NCHW.
    out = out_p[:Ho, :Wo, :NC].reshape(Ho, Wo, N, C)
    return jnp.transpose(out, (2, 3, 0, 1))


def _reference(x, w):
    # jax.lax depthwise conv + tanh, for verification.
    out = jax.lax.conv_general_dilated(
        x,
        w[:, None, :, :],                 # (C, 1, KH, KW) — OIHW with groups=C
        window_strides=(1, 1),
        padding="VALID",
        dimension_numbers=("NCHW", "OIHW", "NCHW"),
        feature_group_count=x.shape[1],
    )
    return jnp.tanh(out)


if __name__ == "__main__":
    key = jax.random.PRNGKey(0)
    kx, kw_key = jax.random.split(key)

    N, C, H, W = 2, 4, 16, 16
    x = jax.random.normal(kx, (N, C, H, W), dtype=jnp.float32)
    # PyTorch depthwise weight shape (C, 1, 3, 3) -> (C, 3, 3).
    w = jax.random.normal(kw_key, (C, KH, KW), dtype=jnp.float32) * 0.2

    out = depthwise_conv_tanh(x, w)
    out = jax.block_until_ready(out)

    ref = _reference(x, w)
    assert out.shape == (N, C, H - 2, W - 2), out.shape
    assert jnp.allclose(out, ref, atol=1e-5, rtol=1e-5), "mismatch vs reference"

    print("KERNEL_OK")
</pallas_src>

<mosaic_0001>
module attributes {stable_mosaic.version = 11 : i64} {
  func.func @_dw_conv_tanh_kernel(%arg0: i32, %arg1: i32, %arg2: memref<18x18x128xf32, #tpu.memory_space<vmem>>, %arg3: memref<3x3x128xf32, #tpu.memory_space<vmem>>, %arg4: memref<8x16x128xf32, #tpu.memory_space<vmem>>) attributes {dimension_semantics = [#tpu.dimension_semantics<parallel>, #tpu.dimension_semantics<parallel>], iteration_bounds = array<i64: 1, 2>, scalar_prefetch = 0 : i64, scratch_operands = 0 : i64, tpu.core_type = #tpu.core_type<tc>, window_params = [{transform_indices = @transform_0, window_bounds = array<i64: 18, 18, 128>}, {transform_indices = @transform_1, window_bounds = array<i64: 3, 3, 128>}, {transform_indices = @transform_2, window_bounds = array<i64: 8, 16, 128>}]} {
    %c8_i32 = arith.constant 8 : i32
    %0 = arith.muli %arg1, %c8_i32 : i32
    %c0 = arith.constant 0 : index
    %c0_0 = arith.constant 0 : index
    %c0_1 = arith.constant 0 : index
    %1 = vector.load %arg3[%c0, %c0_0, %c0_1] : memref<3x3x128xf32, #tpu.memory_space<vmem>>, vector<3x3x128xf32>
    %2 = vector.extract_strided_slice %1 {offsets = [0, 0, 0], sizes = [3, 1, 128], strides = [1, 1, 1]} : vector<3x3x128xf32> to vector<3x1x128xf32>
    %3 = vector.shape_cast %2 : vector<3x1x128xf32> to vector<3x128xf32>
    %4 = vector.shape_cast %3 : vector<3x128xf32> to vector<3x1x128xf32>
    %5 = vector.extract_strided_slice %1 {offsets = [0, 1, 0], sizes = [3, 1, 128], strides = [1, 1, 1]} : vector<3x3x128xf32> to vector<3x1x128xf32>
    %6 = vector.shape_cast %5 : vector<3x1x128xf32> to vector<3x128xf32>
    %7 = vector.shape_cast %6 : vector<3x128xf32> to vector<3x1x128xf32>
    %8 = vector.extract_strided_slice %1 {offsets = [0, 2, 0], sizes = [3, 1, 128], strides = [1, 1, 1]} : vector<3x3x128xf32> to vector<3x1x128xf32>
    %9 = vector.shape_cast %8 : vector<3x1x128xf32> to vector<3x128xf32>
    %10 = vector.shape_cast %9 : vector<3x128xf32> to vector<3x1x128xf32>
    %c0_i32 = arith.constant 0 : i32
    %11 = arith.addi %0, %c0_i32 : i32
    %12 = arith.index_cast %11 : i32 to index
    %c0_2 = arith.constant 0 : index
    %c0_3 = arith.constant 0 : index
    %13 = vector.load %arg2[%12, %c0_2, %c0_3] : memref<18x18x128xf32, #tpu.memory_space<vmem>>, vector<3x16x128xf32>
    %14 = vector.broadcast %4 : vector<3x1x128xf32> to vector<3x16x128xf32>
    %15 = arith.mulf %13, %14 : vector<3x16x128xf32>
    %cst = arith.constant dense<0.000000e+00> : vector<16x128xf32>
    %16 = vector.multi_reduction <add>, %15, %cst [0] : vector<3x16x128xf32> to vector<16x128xf32>
    %17 = arith.index_cast %11 : i32 to index
    %c1 = arith.constant 1 : index
    %c0_4 = arith.constant 0 : index
    %18 = vector.load %arg2[%17, %c1, %c0_4] : memref<18x18x128xf32, #tpu.memory_space<vmem>>, vector<3x16x128xf32>
    %19 = vector.broadcast %7 : vector<3x1x128xf32> to vector<3x16x128xf32>
    %20 = arith.mulf %18, %19 : vector<3x16x128xf32>
    %cst_5 = arith.constant dense<0.000000e+00> : vector<16x128xf32>
    %21 = vector.multi_reduction <add>, %20, %cst_5 [0] : vector<3x16x128xf32> to vector<16x128xf32>
    %22 = arith.addf %16, %21 : vector<16x128xf32>
    %23 = arith.index_cast %11 : i32 to index
    %c2 = arith.constant 2 : index
    %c0_6 = arith.constant 0 : index
    %24 = vector.load %arg2[%23, %c2, %c0_6] : memref<18x18x128xf32, #tpu.memory_space<vmem>>, vector<3x16x128xf32>
    %25 = vector.broadcast %10 : vector<3x1x128xf32> to vector<3x16x128xf32>
    %26 = arith.mulf %24, %25 : vector<3x16x128xf32>
    %cst_7 = arith.constant dense<0.000000e+00> : vector<16x128xf32>
    %27 = vector.multi_reduction <add>, %26, %cst_7 [0] : vector<3x16x128xf32> to vector<16x128xf32>
    %28 = arith.addf %22, %27 : vector<16x128xf32>
    %29 = math.tanh %28 : vector<16x128xf32>
    %30 = vector.shape_cast %29 : vector<16x128xf32> to vector<1x16x128xf32>
    %31 = arith.index_cast %c0_i32 : i32 to index
    %c0_8 = arith.constant 0 : index
    %c0_9 = arith.constant 0 : index
    %32 = vector.load %arg4[%31, %c0_8, %c0_9] : memref<8x16x128xf32, #tpu.memory_space<vmem>>, vector<1x16x128xf32>
    tpu.vector_store %arg4[%31, %c0_8, %c0_9], %30 {strides = array<i32>} : memref<8x16x128xf32, #tpu.memory_space<vmem>>, vector<1x16x128xf32>,
    %c1_i32 = arith.constant 1 : i32
    %33 = arith.addi %0, %c1_i32 : i32
    %34 = arith.index_cast %33 : i32 to index
    %c0_10 = arith.constant 0 : index
    %c0_11 = arith.constant 0 : index
    %35 = vector.load %arg2[%34, %c0_10, %c0_11] : memref<18x18x128xf32, #tpu.memory_space<vmem>>, vector<3x16x128xf32>
    %36 = vector.broadcast %4 : vector<3x1x128xf32> to vector<3x16x128xf32>
    %37 = arith.mulf %35, %36 : vector<3x16x128xf32>
    %cst_12 = arith.constant dense<0.000000e+00> : vector<16x128xf32>
    %38 = vector.multi_reduction <add>, %37, %cst_12 [0] : vector<3x16x128xf32> to vector<16x128xf32>
    %39 = arith.index_cast %33 : i32 to index
    %c1_13 = arith.constant 1 : index
    %c0_14 = arith.constant 0 : index
    %40 = vector.load %arg2[%39, %c1_13, %c0_14] : memref<18x18x128xf32, #tpu.memory_space<vmem>>, vector<3x16x128xf32>
    %41 = vector.broadcast %7 : vector<3x1x128xf32> to vector<3x16x128xf32>
    %42 = arith.mulf %40, %41 : vector<3x16x128xf32>
    %cst_15 = arith.constant dense<0.000000e+00> : vector<16x128xf32>
    %43 = vector.multi_reduction <add>, %42, %cst_15 [0] : vector<3x16x128xf32> to vector<16x128xf32>
    %44 = arith.addf %38, %43 : vector<16x128xf32>
    %45 = arith.index_cast %33 : i32 to index
    %c2_16 = arith.constant 2 : index
    %c0_17 = arith.constant 0 : index
    %46 = vector.load %arg2[%45, %c2_16, %c0_17] : memref<18x18x128xf32, #tpu.memory_space<vmem>>, vector<3x16x128xf32>
    %47 = vector.broadcast %10 : vector<3x1x128xf32> to vector<3x16x128xf32>
    %48 = arith.mulf %46, %47 : vector<3x16x128xf32>
    %cst_18 = arith.constant dense<0.000000e+00> : vector<16x128xf32>
    %49 = vector.multi_reduction <add>, %48, %cst_18 [0] : vector<3x16x128xf32> to vector<16x128xf32>
    %50 = arith.addf %44, %49 : vector<16x128xf32>
    %51 = math.tanh %50 : vector<16x128xf32>
    %52 = vector.shape_cast %51 : vector<16x128xf32> to vector<1x16x128xf32>
    %53 = arith.index_cast %c1_i32 : i32 to index
    %c0_19 = arith.constant 0 : index
    %c0_20 = arith.constant 0 : index
    %54 = vector.load %arg4[%53, %c0_19, %c0_20] : memref<8x16x128xf32, #tpu.memory_space<vmem>>, vector<1x16x128xf32>
    tpu.vector_store %arg4[%53, %c0_19, %c0_20], %52 {strides = array<i32>} : memref<8x16x128xf32, #tpu.memory_space<vmem>>, vector<1x16x128xf32>,
    %c2_i32 = arith.constant 2 : i32
    %55 = arith.addi %0, %c2_i32 : i32
    %56 = arith.index_cast %55 : i32 to index
    %c0_21 = arith.constant 0 : index
    %c0_22 = arith.constant 0 : index
    %57 = vector.load %arg2[%56, %c0_21, %c0_22] : memref<18x18x128xf32, #tpu.memory_space<vmem>>, vector<3x16x128xf32>
    %58 = vector.broadcast %4 : vector<3x1x128xf32> to vector<3x16x128xf32>
    %59 = arith.mulf %57, %58 : vector<3x16x128xf32>
    %cst_23 = arith.constant dense<0.000000e+00> : vector<16x128xf32>
    %60 = vector.multi_reduction <add>, %59, %cst_23 [0] : vector<3x16x128xf32> to vector<16x128xf32>
    %61 = arith.index_cast %55 : i32 to index
    %c1_24 = arith.constant 1 : index
    %c0_25 = arith.constant 0 : index
    %62 = vector.load %arg2[%61, %c1_24, %c0_25] : memref<18x18x128xf32, #tpu.memory_space<vmem>>, vector<3x16x128xf32>
    %63 = vector.broadcast %7 : vector<3x1x128xf32> to vector<3x16x128xf32>
    %64 = arith.mulf %62, %63 : vector<3x16x128xf32>
    %cst_26 = arith.constant dense<0.000000e+00> : vector<16x128xf32>
    %65 = vector.multi_reduction <add>, %64, %cst_26 [0] : vector<3x16x128xf32> to vector<16x128xf32>
    %66 = arith.addf %60, %65 : vector<16x128xf32>
    %67 = arith.index_cast %55 : i32 to index
    %c2_27 = arith.constant 2 : index
    %c0_28 = arith.constant 0 : index
    %68 = vector.load %arg2[%67, %c2_27, %c0_28] : memref<18x18x128xf32, #tpu.memory_space<vmem>>, vector<3x16x128xf32>
    %69 = vector.broadcast %10 : vector<3x1x128xf32> to vector<3x16x128xf32>
    %70 = arith.mulf %68, %69 : vector<3x16x128xf32>
    %cst_29 = arith.constant dense<0.000000e+00> : vector<16x128xf32>
    %71 = vector.multi_reduction <add>, %70, %cst_29 [0] : vector<3x16x128xf32> to vector<16x128xf32>
    %72 = arith.addf %66, %71 : vector<16x128xf32>
    %73 = math.tanh %72 : vector<16x128xf32>
    %74 = vector.shape_cast %73 : vector<16x128xf32> to vector<1x16x128xf32>
    %75 = arith.index_cast %c2_i32 : i32 to index
    %c0_30 = arith.constant 0 : index
    %c0_31 = arith.constant 0 : index
    %76 = vector.load %arg4[%75, %c0_30, %c0_31] : memref<8x16x128xf32, #tpu.memory_space<vmem>>, vector<1x16x128xf32>
    tpu.vector_store %arg4[%75, %c0_30, %c0_31], %74 {strides = array<i32>} : memref<8x16x128xf32, #tpu.memory_space<vmem>>, vector<1x16x128xf32>,
    %c3_i32 = arith.constant 3 : i32
    %77 = arith.addi %0, %c3_i32 : i32
    %78 = arith.index_cast %77 : i32 to index
    %c0_32 = arith.constant 0 : index
    %c0_33 = arith.constant 0 : index
    %79 = vector.load %arg2[%78, %c0_32, %c0_33] : memref<18x18x128xf32, #tpu.memory_space<vmem>>, vector<3x16x128xf32>
    %80 = vector.broadcast %4 : vector<3x1x128xf32> to vector<3x16x128xf32>
    %81 = arith.mulf %79, %80 : vector<3x16x128xf32>
    %cst_34 = arith.constant dense<0.000000e+00> : vector<16x128xf32>
    %82 = vector.multi_reduction <add>, %81, %cst_34 [0] : vector<3x16x128xf32> to vector<16x128xf32>
    %83 = arith.index_cast %77 : i32 to index
    %c1_35 = arith.constant 1 : index
    %c0_36 = arith.constant 0 : index
    %84 = vector.load %arg2[%83, %c1_35, %c0_36] : memref<18x18x128xf32, #tpu.memory_space<vmem>>, vector<3x16x128xf32>
    %85 = vector.broadcast %7 : vector<3x1x128xf32> to vector<3x16x128xf32>
    %86 = arith.mulf %84, %85 : vector<3x16x128xf32>
    %cst_37 = arith.constant dense<0.000000e+00> : vector<16x128xf32>
    %87 = vector.multi_reduction <add>, %86, %cst_37 [0] : vector<3x16x128xf32> to vector<16x128xf32>
    %88 = arith.addf %82, %87 : vector<16x128xf32>
    %89 = arith.index_cast %77 : i32 to index
    %c2_38 = arith.constant 2 : index
    %c0_39 = arith.constant 0 : index
    %90 = vector.load %arg2[%89, %c2_38, %c0_39] : memref<18x18x128xf32, #tpu.memory_space<vmem>>, vector<3x16x128xf32>
    %91 = vector.broadcast %10 : vector<3x1x128xf32> to vector<3x16x128xf32>
    %92 = arith.mulf %90, %91 : vector<3x16x128xf32>
    %cst_40 = arith.constant dense<0.000000e+00> : vector<16x128xf32>
    %93 = vector.multi_reduction <add>, %92, %cst_40 [0] : vector<3x16x128xf32> to vector<16x128xf32>
    %94 = arith.addf %88, %93 : vector<16x128xf32>
    %95 = math.tanh %94 : vector<16x128xf32>
    %96 = vector.shape_cast %95 : vector<16x128xf32> to vector<1x16x128xf32>
    %97 = arith.index_cast %c3_i32 : i32 to index
    %c0_41 = arith.constant 0 : index
    %c0_42 = arith.constant 0 : index
    %98 = vector.load %arg4[%97, %c0_41, %c0_42] : memref<8x16x128xf32, #tpu.memory_space<vmem>>, vector<1x16x128xf32>
    tpu.vector_store %arg4[%97, %c0_41, %c0_42], %96 {strides = array<i32>} : memref<8x16x128xf32, #tpu.memory_space<vmem>>, vector<1x16x128xf32>,
    %c4_i32 = arith.constant 4 : i32
    %99 = arith.addi %0, %c4_i32 : i32
    %100 = arith.index_cast %99 : i32 to index
    %c0_43 = arith.constant 0 : index
    %c0_44 = arith.constant 0 : index
    %101 = vector.load %arg2[%100, %c0_43, %c0_44] : memref<18x18x128xf32, #tpu.memory_space<vmem>>, vector<3x16x128xf32>
    %102 = vector.broadcast %4 : vector<3x1x128xf32> to vector<3x16x128xf32>
    %103 = arith.mulf %101, %102 : vector<3x16x128xf32>
    %cst_45 = arith.constant dense<0.000000e+00> : vector<16x128xf32>
    %104 = vector.multi_reduction <add>, %103, %cst_45 [0] : vector<3x16x128xf32> to vector<16x128xf32>
    %105 = arith.index_cast %99 : i32 to index
    %c1_46 = arith.constant 1 : index
    %c0_47 = arith.constant 0 : index
    %106 = vector.load %arg2[%105, %c1_46, %c0_47] : memref<18x18x128xf32, #tpu.memory_space<vmem>>, vector<3x16x128xf32>
    %107 = vector.broadcast %7 : vector<3x1x128xf32> to vector<3x16x128xf32>
    %108 = arith.mulf %106, %107 : vector<3x16x128xf32>
    %cst_48 = arith.constant dense<0.000000e+00> : vector<16x128xf32>
    %109 = vector.multi_reduction <add>, %108, %cst_48 [0] : vector<3x16x128xf32> to vector<16x128xf32>
    %110 = arith.addf %104, %109 : vector<16x128xf32>
    %111 = arith.index_cast %99 : i32 to index
    %c2_49 = arith.constant 2 : index
    %c0_50 = arith.constant 0 : index
    %112 = vector.load %arg2[%111, %c2_49, %c0_50] : memref<18x18x128xf32, #tpu.memory_space<vmem>>, vector<3x16x128xf32>
    %113 = vector.broadcast %10 : vector<3x1x128xf32> to vector<3x16x128xf32>
    %114 = arith.mulf %112, %113 : vector<3x16x128xf32>
    %cst_51 = arith.constant dense<0.000000e+00> : vector<16x128xf32>
    %115 = vector.multi_reduction <add>, %114, %cst_51 [0] : vector<3x16x128xf32> to vector<16x128xf32>
    %116 = arith.addf %110, %115 : vector<16x128xf32>
    %117 = math.tanh %116 : vector<16x128xf32>
    %118 = vector.shape_cast %117 : vector<16x128xf32> to vector<1x16x128xf32>
    %119 = arith.index_cast %c4_i32 : i32 to index
    %c0_52 = arith.constant 0 : index
    %c0_53 = arith.constant 0 : index
    %120 = vector.load %arg4[%119, %c0_52, %c0_53] : memref<8x16x128xf32, #tpu.memory_space<vmem>>, vector<1x16x128xf32>
    tpu.vector_store %arg4[%119, %c0_52, %c0_53], %118 {strides = array<i32>} : memref<8x16x128xf32, #tpu.memory_space<vmem>>, vector<1x16x128xf32>,
    %c5_i32 = arith.constant 5 : i32
    %121 = arith.addi %0, %c5_i32 : i32
    %122 = arith.index_cast %121 : i32 to index
    %c0_54 = arith.constant 0 : index
    %c0_55 = arith.constant 0 : index
    %123 = vector.load %arg2[%122, %c0_54, %c0_55] : memref<18x18x128xf32, #tpu.memory_space<vmem>>, vector<3x16x128xf32>
    %124 = vector.broadcast %4 : vector<3x1x128xf32> to vector<3x16x128xf32>
    %125 = arith.mulf %123, %124 : vector<3x16x128xf32>
    %cst_56 = arith.constant dense<0.000000e+00> : vector<16x128xf32>
    %126 = vector.multi_reduction <add>, %125, %cst_56 [0] : vector<3x16x128xf32> to vector<16x128xf32>
    %127 = arith.index_cast %121 : i32 to index
    %c1_57 = arith.constant 1 : index
    %c0_58 = arith.constant 0 : index
    %128 = vector.load %arg2[%127, %c1_57, %c0_58] : memref<18x18x128xf32, #tpu.memory_space<vmem>>, vector<3x16x128xf32>
    %129 = vector.broadcast %7 : vector<3x1x128xf32> to vector<3x16x128xf32>
    %130 = arith.mulf %128, %129 : vector<3x16x128xf32>
    %cst_59 = arith.constant dense<0.000000e+00> : vector<16x128xf32>
    %131 = vector.multi_reduction <add>, %130, %cst_59 [0] : vector<3x16x128xf32> to vector<16x128xf32>
    %132 = arith.addf %126, %131 : vector<16x128xf32>
    %133 = arith.index_cast %121 : i32 to index
    %c2_60 = arith.constant 2 : index
    %c0_61 = arith.constant 0 : index
    %134 = vector.load %arg2[%133, %c2_60, %c0_61] : memref<18x18x128xf32, #tpu.memory_space<vmem>>, vector<3x16x128xf32>
    %135 = vector.broadcast %10 : vector<3x1x128xf32> to vector<3x16x128xf32>
    %136 = arith.mulf %134, %135 : vector<3x16x128xf32>
    %cst_62 = arith.constant dense<0.000000e+00> : vector<16x128xf32>
    %137 = vector.multi_reduction <add>, %136, %cst_62 [0] : vector<3x16x128xf32> to vector<16x128xf32>
    %138 = arith.addf %132, %137 : vector<16x128xf32>
    %139 = math.tanh %138 : vector<16x128xf32>
    %140 = vector.shape_cast %139 : vector<16x128xf32> to vector<1x16x128xf32>
    %141 = arith.index_cast %c5_i32 : i32 to index
    %c0_63 = arith.constant 0 : index
    %c0_64 = arith.constant 0 : index
    %142 = vector.load %arg4[%141, %c0_63, %c0_64] : memref<8x16x128xf32, #tpu.memory_space<vmem>>, vector<1x16x128xf32>
    tpu.vector_store %arg4[%141, %c0_63, %c0_64], %140 {strides = array<i32>} : memref<8x16x128xf32, #tpu.memory_space<vmem>>, vector<1x16x128xf32>,
    %c6_i32 = arith.constant 6 : i32
    %143 = arith.addi %0, %c6_i32 : i32
    %144 = arith.index_cast %143 : i32 to index
    %c0_65 = arith.constant 0 : index
    %c0_66 = arith.constant 0 : index
    %145 = vector.load %arg2[%144, %c0_65, %c0_66] : memref<18x18x128xf32, #tpu.memory_space<vmem>>, vector<3x16x128xf32>
    %146 = vector.broadcast %4 : vector<3x1x128xf32> to vector<3x16x128xf32>
    %147 = arith.mulf %145, %146 : vector<3x16x128xf32>
    %cst_67 = arith.constant dense<0.000000e+00> : vector<16x128xf32>
    %148 = vector.multi_reduction <add>, %147, %cst_67 [0] : vector<3x16x128xf32> to vector<16x128xf32>
    %149 = arith.index_cast %143 : i32 to index
    %c1_68 = arith.constant 1 : index
    %c0_69 = arith.constant 0 : index
    %150 = vector.load %arg2[%149, %c1_68, %c0_69] : memref<18x18x128xf32, #tpu.memory_space<vmem>>, vector<3x16x128xf32>
    %151 = vector.broadcast %7 : vector<3x1x128xf32> to vector<3x16x128xf32>
    %152 = arith.mulf %150, %151 : vector<3x16x128xf32>
    %cst_70 = arith.constant dense<0.000000e+00> : vector<16x128xf32>
    %153 = vector.multi_reduction <add>, %152, %cst_70 [0] : vector<3x16x128xf32> to vector<16x128xf32>
    %154 = arith.addf %148, %153 : vector<16x128xf32>
    %155 = arith.index_cast %143 : i32 to index
    %c2_71 = arith.constant 2 : index
    %c0_72 = arith.constant 0 : index
    %156 = vector.load %arg2[%155, %c2_71, %c0_72] : memref<18x18x128xf32, #tpu.memory_space<vmem>>, vector<3x16x128xf32>
    %157 = vector.broadcast %10 : vector<3x1x128xf32> to vector<3x16x128xf32>
    %158 = arith.mulf %156, %157 : vector<3x16x128xf32>
    %cst_73 = arith.constant dense<0.000000e+00> : vector<16x128xf32>
    %159 = vector.multi_reduction <add>, %158, %cst_73 [0] : vector<3x16x128xf32> to vector<16x128xf32>
    %160 = arith.addf %154, %159 : vector<16x128xf32>
    %161 = math.tanh %160 : vector<16x128xf32>
    %162 = vector.shape_cast %161 : vector<16x128xf32> to vector<1x16x128xf32>
    %163 = arith.index_cast %c6_i32 : i32 to index
    %c0_74 = arith.constant 0 : index
    %c0_75 = arith.constant 0 : index
    %164 = vector.load %arg4[%163, %c0_74, %c0_75] : memref<8x16x128xf32, #tpu.memory_space<vmem>>, vector<1x16x128xf32>
    tpu.vector_store %arg4[%163, %c0_74, %c0_75], %162 {strides = array<i32>} : memref<8x16x128xf32, #tpu.memory_space<vmem>>, vector<1x16x128xf32>,
    %c7_i32 = arith.constant 7 : i32
    %165 = arith.addi %0, %c7_i32 : i32
    %166 = arith.index_cast %165 : i32 to index
    %c0_76 = arith.constant 0 : index
    %c0_77 = arith.constant 0 : index
    %167 = vector.load %arg2[%166, %c0_76, %c0_77] : memref<18x18x128xf32, #tpu.memory_space<vmem>>, vector<3x16x128xf32>
    %168 = vector.broadcast %4 : vector<3x1x128xf32> to vector<3x16x128xf32>
    %169 = arith.mulf %167, %168 : vector<3x16x128xf32>
    %cst_78 = arith.constant dense<0.000000e+00> : vector<16x128xf32>
    %170 = vector.multi_reduction <add>, %169, %cst_78 [0] : vector<3x16x128xf32> to vector<16x128xf32>
    %171 = arith.index_cast %165 : i32 to index
    %c1_79 = arith.constant 1 : index
    %c0_80 = arith.constant 0 : index
    %172 = vector.load %arg2[%171, %c1_79, %c0_80] : memref<18x18x128xf32, #tpu.memory_space<vmem>>, vector<3x16x128xf32>
    %173 = vector.broadcast %7 : vector<3x1x128xf32> to vector<3x16x128xf32>
    %174 = arith.mulf %172, %173 : vector<3x16x128xf32>
    %cst_81 = arith.constant dense<0.000000e+00> : vector<16x128xf32>
    %175 = vector.multi_reduction <add>, %174, %cst_81 [0] : vector<3x16x128xf32> to vector<16x128xf32>
    %176 = arith.addf %170, %175 : vector<16x128xf32>
    %177 = arith.index_cast %165 : i32 to index
    %c2_82 = arith.constant 2 : index
    %c0_83 = arith.constant 0 : index
    %178 = vector.load %arg2[%177, %c2_82, %c0_83] : memref<18x18x128xf32, #tpu.memory_space<vmem>>, vector<3x16x128xf32>
    %179 = vector.broadcast %10 : vector<3x1x128xf32> to vector<3x16x128xf32>
    %180 = arith.mulf %178, %179 : vector<3x16x128xf32>
    %cst_84 = arith.constant dense<0.000000e+00> : vector<16x128xf32>
    %181 = vector.multi_reduction <add>, %180, %cst_84 [0] : vector<3x16x128xf32> to vector<16x128xf32>
    %182 = arith.addf %176, %181 : vector<16x128xf32>
    %183 = math.tanh %182 : vector<16x128xf32>
    %184 = vector.shape_cast %183 : vector<16x128xf32> to vector<1x16x128xf32>
    %185 = arith.index_cast %c7_i32 : i32 to index
    %c0_85 = arith.constant 0 : index
    %c0_86 = arith.constant 0 : index
    %186 = vector.load %arg4[%185, %c0_85, %c0_86] : memref<8x16x128xf32, #tpu.memory_space<vmem>>, vector<1x16x128xf32>
    tpu.vector_store %arg4[%185, %c0_85, %c0_86], %184 {strides = array<i32>} : memref<8x16x128xf32, #tpu.memory_space<vmem>>, vector<1x16x128xf32>,
    %c8_i32_87 = arith.constant 8 : i32
    return
  }
  func.func @transform_0(%arg0: i32, %arg1: i32) -> (i32, i32, i32) {
    %c0_i32 = arith.constant 0 : i32
    %c0_i32_0 = arith.constant 0 : i32
    %c0_i32_1 = arith.constant 0 : i32
    return %c0_i32, %c0_i32_0, %arg0 : i32, i32, i32
  }
  func.func @transform_1(%arg0: i32, %arg1: i32) -> (i32, i32, i32) {
    %c0_i32 = arith.constant 0 : i32
    %c0_i32_0 = arith.constant 0 : i32
    %c0_i32_1 = arith.constant 0 : i32
    return %c0_i32, %c0_i32_0, %arg0 : i32, i32, i32
  }
  func.func @transform_2(%arg0: i32, %arg1: i32) -> (i32, i32, i32) {
    %c0_i32 = arith.constant 0 : i32
    %c0_i32_0 = arith.constant 0 : i32
    return %arg1, %c0_i32, %arg0 : i32, i32, i32
  }
}

</mosaic_0001>

<bundles_post_ra>
// kernel: tpu_custom_call.1
= control target key start
LH: loop header
LB: loop body
LE: loop exit
PB: predicated region body
PF: predicated region fallthrough
CT: control target
= control target key end

     0   :  { %7 = vsyncpa [#allocation3], 0  ;;  %s1819_s0 = inlined_call_operand.hbm [shape: f32[18,18,128], index: 0, kind: input, shape index: {}]   ;;  %s1820_s1 = inlined_call_operand.hbm [shape: f32[3,3,128], index: 1, kind: input, shape index: {}]   ;;  %s1821_s2 = inlined_call_operand.hbm [shape: f32[16,16,128], index: 2, kind: output, shape index: {}]  }
   0x1   :  { %8 = vsyncpa [#allocation6], 0 }
   0x2   :  { %9 = vsyncpa [#allocation4], 0 }
   0x3   :  { %11 = vsyncpa [#allocation4 + $0x1], 0  ;;  %s1268_s9 = smov 0   ;;  %s1270_s10 = smov 0  }
   0x4   :  { %s1272_s11 = smov 0   ;;  %s1274_s12 = smov 0  }
   0x5   :  { %s1276_s13 = smov 0   ;;  %s1278_s14 = smov 0  }
   0x6 LB: > { %s810_s15 = sadd.s32 4294967295, %s1243_s14   ;;  %s811_s16 = sadd.s32 4294967294, %s1243_s14   ;;  %s1243_s14 = sphi %s1278_s14, %s17_s14   ;;  %s1239_s13 = sphi %s1276_s13, %s1830_s13   ;;  %s1235_s12 = sphi %s1274_s12, %s1829_s12   ;;  %s1231_s11 = sphi %s1272_s11, %s1828_s11   ;;  %s1227_s10 = sphi %s1270_s10, %s1827_s10   ;;  %s1223_s9 = sphi %s1268_s9, %s1826_s9  }
   0x7   : > { %s26_s17 = sadd.s32 1, %s1239_s13  ;;  %s90_s18 = sadd.s32 1, %s1231_s11 }
   0x8   : > { %p27_p0 = scmp.ge.s32.totalorder %s26_s17, 2  ;;  %p100_p1 = scmp.ne.s32.totalorder %s1231_s11, %s1227_s10 }
   0x9   : > { %p101_p2 = scmp.eq.s32.totalorder %s810_s15, 1  ;;  %p106_p3 = scmp.ne.s32.totalorder %s1227_s10, %s1223_s9 }
   0xa   : > { %s1832_s17 = smov (%p27_p0, %s26_s17), 0  ;;  %p107_p5 = scmp.eq.s32.totalorder %s811_s16, 1 }
   0xb   : > { %p1308_p4 = por %p101_p2, %p100_p1  ;;  %s85_s20 = ssub.s32 %s1239_s13, %s1832_s17 }
   0xc   : > { %p812_p6 = scmp.ge.s32.totalorder %s1243_s14, 1  ;;  %p88_p7 = scmp.eq.s32.totalorder %s85_s20, 0 }
   0xd   : > { %p1315_p8 = por %p107_p5, %p106_p3  ;;  %p114_p9 = scmp.lt.s32.totalorder %s1243_s14, 3 }
   0xe   : > { %s1321_s22 = scalar_select %p88_p7, %s1231_s11, %s90_s18  }
   0xf   : > { %p1323_p10 = pnand %p812_p6, %p114_p9  ;;  %p1327_p11 = scmp.eq.s32.totalorder %s810_s15, 0 }
  0x10   : > { %s127_s27 = sshll.u32 %s1819_s0, 4  ;;  %s1245_s28 = smov [#allocation2]   ;;  %s128_s27 = int_to_ptr.hbm [resolvable:$true] %s127_s27 }
  0x11   : > { %p993_p12 = pneg %p1323_p10  ;;  %s129_s29 = sshll.u32 %s1245_s28, 4  ;;  %s130_s29 = int_to_ptr.vmem [resolvable:$true] %s129_s29 }
  0x12   : > { %s143_s4 = sshll.u32 %s1820_s1, 4  ;;  %s1246_s5 = smov 128   ;;  %s144_s4 = int_to_ptr.hbm [resolvable:$true] %s143_s4 }
  0x13   : > { %p994_p13 = pnand %p1327_p11, %p993_p12  ;;  %s1247_s6 = smov 8  }
  0x14   : > { %s1248_s7 = smov [#allocation5]   ;;  %s1249_s15 = smov 64  }
  0x15   : > { %996 = dma.hbm_to_vmem [thread:$0]  (!%p994_p13), %s128_s27, 6912, %s130_s29, [#allocation3], %s1246_s5, %s1246_s5, %s1247_s6  }
  0x16   : > { %s145_s8 = sshll.u32 %s1248_s7, 4  ;;  %s1250_s16 = smov 4   ;;  %s146_s8 = int_to_ptr.vmem [resolvable:$true] %s145_s8 }
  0x17   : > { %999 = dma.hbm_to_vmem [thread:$0]  (!%p994_p13), %s144_s4, 192, %s146_s8, [#allocation6], %s1249_s15, %s1249_s15, %s1250_s16  }
  0x18   : > { %161 = sbr.rel (%p1323_p10) target bundleno = 124 (0x7c), region = 28 }
  0x1d   : > { %1210 = dma.done.wait (%p1327_p11), [#allocation3], 6912  }
  0x1e   : > { %1212 = vsyncadd (%p1327_p11), [#allocation3], 4294960384 }
  0x1f   : > { %1214 = dma.done.wait (%p1327_p11), [#allocation6], 192  }
  0x20   : > { %1216 = vsyncadd (%p1327_p11), [#allocation6], 4294967104  ;;  %s820_s18 = smul.u32 192, %s1235_s12  ;;  %v186_v0 = vld [vmem:[#allocation5] sm:$0x7]  ;;  %s181_s23 = sand.u32 1, %s1227_s10  }
  0x21   : > { %v187_v1 = vld [vmem:[#allocation5 + $0x4] sm:$0x7]  ;;  %v188_v2 = vld [vmem:[#allocation5 + $0x8] sm:$0x7]  ;;  %v1356_v5 = vperm.slane %v186_v0, 0  ;;  %v1367_v11 = vperm.slane %v186_v0, 1 }
  0x22   : > { %s1352_s20 = scalar_lea.vmem [#allocation2], %s820_s18  ;;  %v1358_v6 = vperm.slane %v187_v1, 0  ;;  %v1360_v7 = vperm.slane %v188_v2, 0  ;;  %v1369_v12 = vperm.slane %v187_v1, 1  ;;  %v1371_v13 = vperm.slane %v188_v2, 1  ;;  %s1453_s24 = sshll.u32 %s181_s23, 7 }
  0x23   : > { %v191_v3 = vld [vmem:[%s1352_s20] sm:$0xff]  ;;  %v193_v4 = vld [vmem:[%s1352_s20 + $0x18] sm:$0xff]  ;;  %v1363_v8 = vld [vmem:[%s1352_s20 + $0x30] sm:$0xff]  ;;  %v1382_v20 = vperm.slane %v186_v0, 2  ;;  %v1388_v24 = vperm.slane %v187_v1, 2  ;;  %v1392_v28 = vperm.slane %v188_v2, 2 }
  0x24   : > { %v210_v9 = vld [vmem:[%s1352_s20 + $0x1] sm:$0xff]  ;;  %v212_v10 = vld [vmem:[%s1352_s20 + $0x19] sm:$0xff]  ;;  %v200_v14 = vmul.f32 %v1356_v5, %v191_v3  ;;  %v202_v15 = vmul.f32 %v1358_v6, %v193_v4  ;;  %v204_v16 = vmul.f32 %v1360_v7, %v1363_v8  ;;  %v1378_v17 = vld [vmem:[%s1352_s20 + $0x31] sm:$0xff]  ;;  %v265_v59 = vmul.f32 %v1356_v5, %v193_v4  ;;  %s1492_s25 = scalar_lea.vmem [#allocation7], %s1453_s24  ;;  %s982_s26 = sshll.u32 %s1235_s12, 7 }
  0x25   : > { %v231_v18 = vld [vmem:[%s1352_s20 + $0x2] sm:$0xff]  ;;  %v233_v19 = vld [vmem:[%s1352_s20 + $0x1a] sm:$0xff]  ;;  %v219_v21 = vmul.f32 %v1367_v11, %v210_v9  ;;  %v221_v22 = vmul.f32 %v1369_v12, %v212_v10  ;;  %v223_v23 = vmul.f32 %v1371_v13, %v1378_v17  ;;  %v1402_v35 = vld [vmem:[%s1352_s20 + $0x32] sm:$0xff]  ;;  %v267_v62 = vmul.f32 %v1358_v6, %v1363_v8  ;;  %s690_s29 = scalar_lea.hbm %s1821_s2, %s982_s26  ;;  %s691_s30 = sshll.u32 %s1492_s25, 4  ;;  %s692_s30 = int_to_ptr.vmem [resolvable:$true] %s691_s30 }
  0x26   : > { %v192_v25 = vld [vmem:[%s1352_s20 + $0x8] sm:$0xff]  ;;  %v194_v26 = vld [vmem:[%s1352_s20 + $0x20] sm:$0xff]  ;;  %v206_v27 = vadd.f32 %v202_v15, %v200_v14  ;;  %v240_v29 = vmul.f32 %v1382_v20, %v231_v18  ;;  %v1396_v30 = vld [vmem:[%s1352_s20 + $0x38] sm:$0xff]  ;;  %v242_v36 = vmul.f32 %v1388_v24, %v233_v19  ;;  %v244_v42 = vmul.f32 %v1392_v28, %v1402_v35  ;;  %s693_s3 = sshll.u32 %s690_s29, 4  ;;  %s677_s4 = scalar_lea.sflag [#allocation4], %s181_s23  ;;  %s694_s3 = int_to_ptr.hbm [resolvable:$true] %s693_s3 }
  0x27   : > { %v201_v31 = vmul.f32 %v1356_v5, %v192_v25  ;;  %v211_v32 = vld [vmem:[%s1352_s20 + $0x9] sm:$0xff]  ;;  %v213_v33 = vld [vmem:[%s1352_s20 + $0x21] sm:$0xff]  ;;  %v225_v34 = vadd.f32 %v221_v22, %v219_v21  ;;  %v203_v37 = vmul.f32 %v1358_v6, %v194_v26  ;;  %v205_v38 = vmul.f32 %v1360_v7, %v1396_v30  ;;  %v1413_v43 = vld [vmem:[%s1352_s20 + $0x39] sm:$0xff]  ;;  %s1171_s12 = sshra.s32 %s694_s3, 4  ;;  %s1177_s8 = scalar_lea.hbm %s1821_s2, 256  ;;  %s1172_s12 = int_to_ptr.hbm [resolvable:$true] %s1171_s12 }
  0x28   : > { %v232_v39 = vld [vmem:[%s1352_s20 + $0xa] sm:$0xff]  ;;  %v234_v40 = vld [vmem:[%s1352_s20 + $0x22] sm:$0xff]  ;;  %v207_v41 = vadd.f32 %v206_v27, %v204_v16  ;;  %v220_v44 = vmul.f32 %v1367_v11, %v211_v32  ;;  %v222_v45 = vmul.f32 %v1369_v12, %v213_v33  ;;  %v246_v47 = vadd.f32 %v242_v36, %v240_v29  ;;  %v1420_v50 = vld [vmem:[%s1352_s20 + $0x3a] sm:$0xff]  ;;  %s1173_s5 = scalar_lea.hbm %s1172_s12, 128  ;;  %p1178_p3 = scmp.lt.s32.totalorder %s1172_s12, %s1821_s2 }
  0x29   : > { %v226_v46 = vadd.f32 %v225_v34, %v223_v23  ;;  %v208_v48 = vadd.f32 %v203_v37, %v201_v31  ;;  %v224_v49 = vmul.f32 %v1371_v13, %v1413_v43  ;;  %v241_v52 = vmul.f32 %v1382_v20, %v232_v39  ;;  %v1427_v58 = vld [vmem:[%s1352_s20 + $0x48] sm:$0xff]  ;;  %v1456_v27 = vld [vmem:[%s1352_s20 + $0x50] sm:$0xff]  ;;  %p1174_p0 = scmp.ne.s32.totalorder %s1172_s12, %s1173_s5  ;;  %p1179_p5 = scmp.lt.s32.totalorder %s1177_s8, %s1173_s5 }
  0x2a   : > { %v227_v51 = vadd.f32 %v222_v45, %v220_v44  ;;  %v243_v53 = vmul.f32 %v1388_v24, %v234_v40  ;;  %v245_v54 = vmul.f32 %v1392_v28, %v1420_v50  ;;  %v247_v56 = vadd.f32 %v246_v47, %v244_v42  ;;  %v1435_v0 = vld [vmem:[%s1352_s20 + $0x49] sm:$0xff]  ;;  %v1464_v36 = vld [vmem:[%s1352_s20 + $0x51] sm:$0xff] }
  0x2b   : > { %v229_v55 = vadd.f32 %v226_v46, %v207_v41  ;;  %v209_v57 = vadd.f32 %v208_v48, %v205_v38  ;;  %v269_v63 = vmul.f32 %v1427_v58, %v1360_v7  ;;  %v281_v2 = vmul.f32 %v1367_v11, %v212_v10  ;;  %v1444_v16 = vld [vmem:[%s1352_s20 + $0x4a] sm:$0xff]  ;;  %v1472_v44 = vld [vmem:[%s1352_s20 + $0x52] sm:$0xff]  ;;  %p1175_p1 = pnand %p1174_p0, %p1308_p4  ;;  %p1180_p6 = por %p1179_p5, %p1178_p3 }
  0x2c   : > { %v228_v60 = vadd.f32 %v227_v51, %v224_v49  ;;  %v248_v61 = vadd.f32 %v243_v53, %v241_v52  ;;  %v283_v3 = vmul.f32 %v1369_v12, %v1378_v17  ;;  %v285_v4 = vmul.f32 %v1435_v0, %v1371_v13  ;;  %v1480_v49 = vld [vmem:[%s1352_s20 + $0x60] sm:$0xff] }
  0x2d   : > { %v250_v1 = vadd.f32 %v247_v56, %v229_v55  ;;  %v271_v15 = vadd.f32 %v267_v62, %v265_v59  ;;  %v299_v18 = vmul.f32 %v1382_v20, %v233_v19  ;;  %v301_v22 = vmul.f32 %v1388_v24, %v1402_v35  ;;  %v1489_v56 = vld [vmem:[%s1352_s20 + $0x61] sm:$0xff]  ;;  %p1176_p2 = pneg %p1175_p1 }
  0x2e   : > { %v230_v9 = vadd.f32 %v228_v60, %v209_v57  ;;  %v249_v14 = vadd.f32 %v248_v61, %v245_v54  ;;  %v287_v21 = vadd.f32 %v283_v3, %v281_v2  ;;  %v303_v10 = vmul.f32 %v1444_v16, %v1392_v28 }
  0x2f   : > { %1065 = vtanh.f32 %v250_v1  ;;  %v272_v25 = vadd.f32 %v271_v15, %v269_v63  ;;  %v266_v29 = vmul.f32 %v1356_v5, %v194_v26  ;;  %v268_v19 = vmul.f32 %v1358_v6, %v1396_v30  ;;  %v1502_v63 = vld [vmem:[%s1352_s20 + $0x62] sm:$0xff]  ;;  %p1181_p7 = pnand %p1180_p6, %p1176_p2 }
  0x30   : > { %v251_v23 = vadd.f32 %v249_v14, %v230_v9  ;;  %v288_v31 = vadd.f32 %v287_v21, %v285_v4  ;;  %v305_v32 = vadd.f32 %v301_v22, %v299_v18  ;;  %v270_v34 = vmul.f32 %v1456_v27, %v1360_v7  ;;  %v1511_v14 = vld [vmem:[%s1352_s20 + $0x68] sm:$0xff] }
  0x31   : > { %v282_v37 = vmul.f32 %v1367_v11, %v213_v33  ;;  %v273_v38 = vadd.f32 %v268_v19, %v266_v29  ;;  %v284_v39 = vmul.f32 %v1369_v12, %v1413_v43  ;;  %v286_v26 = vmul.f32 %v1464_v36, %v1371_v13 }
  0x32   : > { %1067 = vtanh.f32 %v251_v23  ;;  %v291_v41 = vadd.f32 %v288_v31, %v272_v25  ;;  %v306_v42 = vadd.f32 %v305_v32, %v303_v10  ;;  %v300_v45 = vmul.f32 %v1382_v20, %v234_v40  ;;  %v1521_v25 = vld [vmem:[%s1352_s20 + $0x69] sm:$0xff] }
  0x33   : > { %v302_v46 = vmul.f32 %v1388_v24, %v1420_v50  ;;  %v274_v33 = vadd.f32 %v273_v38, %v270_v34  ;;  %v289_v47 = vadd.f32 %v284_v39, %v282_v37  ;;  %v304_v48 = vmul.f32 %v1472_v44, %v1392_v28  ;;  %v1532_v38 = vld [vmem:[%s1352_s20 + $0x6a] sm:$0xff] }
  0x34   : > { %v325_v51 = vmul.f32 %v1356_v5, %v1363_v8  ;;  %v309_v53 = vadd.f32 %v306_v42, %v291_v41  ;;  %v327_v40 = vmul.f32 %v1427_v58, %v1358_v6  ;;  %v329_v55 = vmul.f32 %v1480_v49, %v1360_v7 }
  0x35   : > { %v1066_v52 = vpop.eup %1065  ;;  %v307_v54 = vadd.f32 %v302_v46, %v300_v45  ;;  %v290_v57 = vadd.f32 %v289_v47, %v286_v26  ;;  %v341_v8 = vmul.f32 %v1367_v11, %v1378_v17  ;;  %v343_v59 = vmul.f32 %v1435_v0, %v1369_v12  ;;  %v1539_v45 = vld [vmem:[%s1352_s20 + $0x78] sm:$0xff] }
  0x36   : > { %254 = vst [vmem:[%s1492_s25] sm:$0xff] %v1066_v52  ;;  %v345_v60 = vmul.f32 %v1489_v56, %v1371_v13  ;;  %1069 = vtanh.f32 %v309_v53  ;;  %v331_v62 = vadd.f32 %v327_v40, %v325_v51  ;;  %v359_v1 = vmul.f32 %v1382_v20, %v1402_v35  ;;  %v1549_v51 = vld [vmem:[%s1352_s20 + $0x79] sm:$0xff] }
  0x37   : > { %v308_v61 = vadd.f32 %v307_v54, %v304_v48  ;;  %v292_v3 = vadd.f32 %v290_v57, %v274_v33  ;;  %v347_v4 = vadd.f32 %v343_v59, %v341_v8  ;;  %v361_v17 = vmul.f32 %v1444_v16, %v1388_v24  ;;  %v1558_v57 = vld [vmem:[%s1352_s20 + $0x7a] sm:$0xff] }
  0x38   : > { %v1068_v2 = vpop.eup %1067  ;;  %v363_v9 = vmul.f32 %v1502_v63, %v1392_v28  ;;  %v332_v15 = vadd.f32 %v331_v62, %v329_v55  ;;  %v326_v18 = vmul.f32 %v1356_v5, %v1396_v30  ;;  %v328_v35 = vmul.f32 %v1456_v27, %v1358_v6  ;;  %v1567_v62 = vld [vmem:[%s1352_s20 + $0x80] sm:$0xff] }
  0x39   : > { %255 = vst [vmem:[%s1492_s25 + $0x8] sm:$0xff] %v1068_v2  ;;  %v330_v21 = vmul.f32 %v1511_v14, %v1360_v7  ;;  %v310_v22 = vadd.f32 %v308_v61, %v292_v3  ;;  %v348_v10 = vadd.f32 %v347_v4, %v345_v60  ;;  %v365_v23 = vadd.f32 %v361_v17, %v359_v1 }
  0x3a   : > { %v342_v29 = vmul.f32 %v1367_v11, %v1413_v43  ;;  %v333_v19 = vadd.f32 %v328_v35, %v326_v18  ;;  %v344_v30 = vmul.f32 %v1464_v36, %v1369_v12  ;;  %v346_v31 = vmul.f32 %v1521_v25, %v1371_v13  ;;  %v1577_v18 = vld [vmem:[%s1352_s20 + $0x81] sm:$0xff] }
  0x3b   : > { %v360_v32 = vmul.f32 %v1382_v20, %v1420_v50  ;;  %1071 = vtanh.f32 %v310_v22  ;;  %v351_v34 = vadd.f32 %v348_v10, %v332_v15  ;;  %v366_v37 = vadd.f32 %v365_v23, %v363_v9 }
  0x3c   : > { %v362_v43 = vmul.f32 %v1472_v44, %v1388_v24  ;;  %v1070_v39 = vpop.eup %1069  ;;  %v334_v26 = vadd.f32 %v333_v19, %v330_v21  ;;  %v349_v41 = vadd.f32 %v344_v30, %v342_v29  ;;  %v364_v42 = vmul.f32 %v1532_v38, %v1392_v28  ;;  %v1588_v19 = vld [vmem:[%s1352_s20 + $0x82] sm:$0xff] }
  0x3d   : > { %v385_v50 = vmul.f32 %v1427_v58, %v1356_v5  ;;  %841 = vst [vmem:[%s1492_s25 + $0x10] sm:$0xff] %v1070_v39  ;;  %v369_v46 = vadd.f32 %v366_v37, %v351_v34  ;;  %v387_v47 = vmul.f32 %v1480_v49, %v1358_v6  ;;  %v389_v48 = vmul.f32 %v1539_v45, %v1360_v7  ;;  %v1595_v37 = vld [vmem:[%s1352_s20 + $0x90] sm:$0xff] }
  0x3e   : > { %v367_v33 = vadd.f32 %v362_v43, %v360_v32  ;;  %v350_v52 = vadd.f32 %v349_v41, %v346_v31  ;;  %v401_v53 = vmul.f32 %v1435_v0, %v1367_v11  ;;  %v403_v54 = vmul.f32 %v1489_v56, %v1369_v12 }
  0x3f   : > { %v405_v58 = vmul.f32 %v1549_v51, %v1371_v13  ;;  %1073 = vtanh.f32 %v369_v46  ;;  %v391_v55 = vadd.f32 %v387_v47, %v385_v50  ;;  %v419_v8 = vmul.f32 %v1444_v16, %v1382_v20 }
  0x40   : > { %v368_v40 = vadd.f32 %v367_v33, %v364_v42  ;;  %v352_v59 = vadd.f32 %v350_v52, %v334_v26  ;;  %v407_v60 = vadd.f32 %v403_v54, %v401_v53  ;;  %v421_v0 = vmul.f32 %v1502_v63, %v1388_v24  ;;  %v1605_v42 = vld [vmem:[%s1352_s20 + $0x91] sm:$0xff] }
  0x41   : > { %v423_v61 = vmul.f32 %v1558_v57, %v1392_v28  ;;  %v1072_v1 = vpop.eup %1071  ;;  %v392_v2 = vadd.f32 %v391_v55, %v389_v48  ;;  %v386_v3 = vmul.f32 %v1456_v27, %v1356_v5  ;;  %v388_v4 = vmul.f32 %v1511_v14, %v1358_v6  ;;  %v1614_v52 = vld [vmem:[%s1352_s20 + $0x92] sm:$0xff] }
  0x42   : > { %v390_v16 = vmul.f32 %v1567_v62, %v1360_v7  ;;  %842 = vst [vmem:[%s1492_s25 + $0x18] sm:$0xff] %v1072_v1  ;;  %v370_v17 = vadd.f32 %v368_v40, %v352_v59  ;;  %v408_v9 = vadd.f32 %v407_v60, %v405_v58  ;;  %v425_v15 = vadd.f32 %v421_v0, %v419_v8  ;;  %v1623_v55 = vld [vmem:[%s1352_s20 + $0x98] sm:$0xff] }
  0x43   : > { %v402_v35 = vmul.f32 %v1464_v36, %v1367_v11  ;;  %v393_v21 = vadd.f32 %v388_v4, %v386_v3  ;;  %v404_v27 = vmul.f32 %v1521_v25, %v1369_v12  ;;  %v406_v22 = vmul.f32 %v1577_v18, %v1371_v13  ;;  %v1633_v3 = vld [vmem:[%s1352_s20 + $0x99] sm:$0xff] }
  0x44   : > { %v420_v10 = vmul.f32 %v1472_v44, %v1382_v20  ;;  %1075 = vtanh.f32 %v370_v17  ;;  %v411_v23 = vadd.f32 %v408_v9, %v392_v2  ;;  %v426_v29 = vadd.f32 %v425_v15, %v423_v61 }
  0x45   : > { %v422_v36 = vmul.f32 %v1532_v38, %v1388_v24  ;;  %v1074_v30 = vpop.eup %1073  ;;  %v394_v31 = vadd.f32 %v393_v21, %v390_v16  ;;  %v409_v32 = vadd.f32 %v404_v27, %v402_v35  ;;  %v424_v34 = vmul.f32 %v1588_v19, %v1392_v28  ;;  %v1644_v21 = vld [vmem:[%s1352_s20 + $0x9a] sm:$0xff] }
  0x46   : > { %v445_v44 = vmul.f32 %v1480_v49, %v1356_v5  ;;  %863 = vst [vmem:[%s1492_s25 + $0x20] sm:$0xff] %v1074_v30  ;;  %v429_v43 = vadd.f32 %v426_v29, %v411_v23  ;;  %v447_v26 = vmul.f32 %v1539_v45, %v1358_v6  ;;  %v449_v41 = vmul.f32 %v1595_v37, %v1360_v7  ;;  %v1651_v29 = vld [vmem:[%s1352_s20 + $0xa8] sm:$0xff] }
  0x47   : > { %v427_v39 = vadd.f32 %v422_v36, %v420_v10  ;;  %v410_v50 = vadd.f32 %v409_v32, %v406_v22  ;;  %v461_v46 = vmul.f32 %v1489_v56, %v1367_v11  ;;  %v463_v33 = vmul.f32 %v1549_v51, %v1369_v12 }
  0x48   : > { %v465_v49 = vmul.f32 %v1605_v42, %v1371_v13  ;;  %1077 = vtanh.f32 %v429_v43  ;;  %v451_v48 = vadd.f32 %v447_v26, %v445_v44  ;;  %v479_v53 = vmul.f32 %v1502_v63, %v1382_v20 }
  0x49   : > { %v428_v47 = vadd.f32 %v427_v39, %v424_v34  ;;  %v412_v54 = vadd.f32 %v410_v50, %v394_v31  ;;  %v467_v58 = vadd.f32 %v463_v33, %v461_v46  ;;  %v481_v56 = vmul.f32 %v1558_v57, %v1388_v24  ;;  %v1661_v34 = vld [vmem:[%s1352_s20 + $0xa9] sm:$0xff] }
  0x4a   : > { %v483_v40 = vmul.f32 %v1614_v52, %v1392_v28  ;;  %v1076_v8 = vpop.eup %1075  ;;  %v452_v59 = vadd.f32 %v451_v48, %v449_v41  ;;  %v446_v60 = vmul.f32 %v1511_v14, %v1356_v5  ;;  %v448_v0 = vmul.f32 %v1567_v62, %v1358_v6  ;;  %v1670_v50 = vld [vmem:[%s1352_s20 + $0xaa] sm:$0xff] }
  0x4b   : > { %v450_v63 = vmul.f32 %v1623_v55, %v1360_v7  ;;  %864 = vst [vmem:[%s1492_s25 + $0x28] sm:$0xff] %v1076_v8  ;;  %v430_v61 = vadd.f32 %v428_v47, %v412_v54  ;;  %v468_v1 = vadd.f32 %v467_v58, %v465_v49  ;;  %v485_v2 = vadd.f32 %v481_v56, %v479_v53  ;;  %v1679_v48 = vld [vmem:[%s1352_s20 + $0xb0] sm:$0xff] }
  0x4c   : > { %v462_v4 = vmul.f32 %v1521_v25, %v1367_v11  ;;  %v453_v16 = vadd.f32 %v448_v0, %v446_v60  ;;  %v464_v14 = vmul.f32 %v1577_v18, %v1369_v12  ;;  %v466_v17 = vmul.f32 %v1633_v3, %v1371_v13  ;;  %v1689_v60 = vld [vmem:[%s1352_s20 + $0xb1] sm:$0xff] }
  0x4d   : > { %v480_v9 = vmul.f32 %v1532_v38, %v1382_v20  ;;  %1079 = vtanh.f32 %v430_v61  ;;  %v471_v15 = vadd.f32 %v468_v1, %v452_v59  ;;  %v486_v35 = vadd.f32 %v485_v2, %v483_v40 }
  0x4e   : > { %v482_v25 = vmul.f32 %v1588_v19, %v1388_v24  ;;  %v1078_v27 = vpop.eup %1077  ;;  %v454_v22 = vadd.f32 %v453_v16, %v450_v63  ;;  %v469_v10 = vadd.f32 %v464_v14, %v462_v4  ;;  %v484_v23 = vmul.f32 %v1644_v21, %v1392_v28  ;;  %v1700_v16 = vld [vmem:[%s1352_s20 + $0xb2] sm:$0xff] }
  0x4f   : > { %v505_v38 = vmul.f32 %v1539_v45, %v1356_v5  ;;  %885 = vst [vmem:[%s1492_s25 + $0x30] sm:$0xff] %v1078_v27  ;;  %v489_v36 = vadd.f32 %v486_v35, %v471_v15  ;;  %v507_v31 = vmul.f32 %v1595_v37, %v1358_v6  ;;  %v509_v32 = vmul.f32 %v1651_v29, %v1360_v7  ;;  %v937_v35 = vld [vmem:[%s1352_s20 + $0xc0] sm:$0xff] }
  0x50   : > { %v487_v30 = vadd.f32 %v482_v25, %v480_v9  ;;  %v470_v44 = vadd.f32 %v469_v10, %v466_v17  ;;  %v521_v43 = vmul.f32 %v1549_v51, %v1367_v11  ;;  %v523_v39 = vmul.f32 %v1605_v42, %v1369_v12 }
  0x51   : > { %v525_v45 = vmul.f32 %v1661_v34, %v1371_v13  ;;  %1081 = vtanh.f32 %v489_v36  ;;  %v511_v41 = vadd.f32 %v507_v31, %v505_v38  ;;  %v539_v46 = vmul.f32 %v1558_v57, %v1382_v20 }
  0x52   : > { %v488_v26 = vadd.f32 %v487_v30, %v484_v23  ;;  %v472_v33 = vadd.f32 %v470_v44, %v454_v22  ;;  %v527_v49 = vadd.f32 %v523_v39, %v521_v43  ;;  %v541_v51 = vmul.f32 %v1614_v52, %v1388_v24  ;;  %v943_v23 = vld [vmem:[%s1352_s20 + $0xc1] sm:$0xff] }
  0x53   : > { %v543_v47 = vmul.f32 %v1670_v50, %v1392_v28  ;;  %v1080_v53 = vpop.eup %1079  ;;  %v512_v54 = vadd.f32 %v511_v41, %v509_v32  ;;  %v506_v58 = vmul.f32 %v1567_v62, %v1356_v5  ;;  %v508_v56 = vmul.f32 %v1623_v55, %v1358_v6  ;;  %v949_v44 = vld [vmem:[%s1352_s20 + $0xc2] sm:$0xff] }
  0x54   : > { %v510_v57 = vmul.f32 %v1679_v48, %v1360_v7  ;;  %886 = vst [vmem:[%s1492_s25 + $0x38] sm:$0xff] %v1080_v53  ;;  %v490_v40 = vadd.f32 %v488_v26, %v472_v33  ;;  %v528_v8 = vadd.f32 %v527_v49, %v525_v45  ;;  %v545_v59 = vadd.f32 %v541_v51, %v539_v46  ;;  %v938_v41 = vld [vmem:[%s1352_s20 + $0xc8] sm:$0xff] }
  0x55   : > { %v522_v0 = vmul.f32 %v1577_v18, %v1367_v11  ;;  %v513_v63 = vadd.f32 %v508_v56, %v506_v58  ;;  %v524_v62 = vmul.f32 %v1633_v3, %v1369_v12  ;;  %v526_v61 = vmul.f32 %v1689_v60, %v1371_v13  ;;  %v944_v58 = vld [vmem:[%s1352_s20 + $0xc9] sm:$0xff] }
  0x56   : > { %v540_v1 = vmul.f32 %v1588_v19, %v1382_v20  ;;  %1083 = vtanh.f32 %v490_v40  ;;  %v531_v2 = vadd.f32 %v528_v8, %v512_v54  ;;  %v546_v4 = vadd.f32 %v545_v59, %v543_v47  ;;  %v959_v59 = vld [vmem:[%s1352_s20 + $0xd8] sm:$0xff] }
  0x57   : > { %v542_v18 = vmul.f32 %v1644_v21, %v1388_v24  ;;  %v1082_v14 = vpop.eup %1081  ;;  %v514_v17 = vadd.f32 %v513_v63, %v510_v57  ;;  %v529_v9 = vadd.f32 %v524_v62, %v522_v0  ;;  %v544_v15 = vmul.f32 %v1700_v16, %v1392_v28  ;;  %v950_v62 = vld [vmem:[%s1352_s20 + $0xca] sm:$0xff] }
  0x58   : > { %v565_v19 = vmul.f32 %v1595_v37, %v1356_v5  ;;  %907 = vst [vmem:[%s1492_s25 + $0x40] sm:$0xff] %v1082_v14  ;;  %v549_v25 = vadd.f32 %v546_v4, %v531_v2  ;;  %v567_v22 = vmul.f32 %v1651_v29, %v1358_v6  ;;  %v569_v10 = vmul.f32 %v937_v35, %v1360_v7 }
  0x59   : > { %v547_v27 = vadd.f32 %v542_v18, %v540_v1  ;;  %v530_v38 = vadd.f32 %v529_v9, %v526_v61  ;;  %v581_v36 = vmul.f32 %v1605_v42, %v1367_v11  ;;  %v583_v30 = vmul.f32 %v1661_v34, %v1369_v12 }
  0x5a   : > { %v585_v31 = vmul.f32 %v943_v23, %v1371_v13  ;;  %1085 = vtanh.f32 %v549_v25  ;;  %v571_v32 = vadd.f32 %v567_v22, %v565_v19  ;;  %v599_v43 = vmul.f32 %v1614_v52, %v1382_v20  ;;  %v971_v19 = vld [vmem:[%s1352_s20 + $0xda] sm:$0xff] }
  0x5b   : > { %v548_v37 = vadd.f32 %v547_v27, %v544_v15  ;;  %v532_v39 = vadd.f32 %v530_v38, %v514_v17  ;;  %v587_v45 = vadd.f32 %v583_v30, %v581_v36  ;;  %v601_v26 = vmul.f32 %v1670_v50, %v1388_v24  ;;  %v960_v38 = vld [vmem:[%s1352_s20 + $0xe0] sm:$0xff] }
  0x5c   : > { %v603_v42 = vmul.f32 %v949_v44, %v1392_v28  ;;  %v1084_v46 = vpop.eup %1083  ;;  %v572_v33 = vadd.f32 %v571_v32, %v569_v10  ;;  %v566_v49 = vmul.f32 %v1623_v55, %v1356_v5  ;;  %v568_v51 = vmul.f32 %v1679_v48, %v1358_v6 }
  0x5d   : > { %v570_v52 = vmul.f32 %v938_v41, %v1360_v7  ;;  %908 = vst [vmem:[%s1492_s25 + $0x48] sm:$0xff] %v1084_v46  ;;  %v550_v47 = vadd.f32 %v548_v37, %v532_v39  ;;  %v588_v53 = vadd.f32 %v587_v45, %v585_v31  ;;  %v605_v54 = vadd.f32 %v601_v26, %v599_v43 }
  0x5e   : > { %v582_v56 = vmul.f32 %v1633_v3, %v1367_v11  ;;  %v573_v57 = vadd.f32 %v568_v51, %v566_v49  ;;  %v584_v55 = vmul.f32 %v1689_v60, %v1369_v12  ;;  %v586_v40 = vmul.f32 %v944_v58, %v1371_v13  ;;  %v965_v3 = vld [vmem:[%s1352_s20 + $0xd9] sm:$0xff] }
  0x5f   : > { %v600_v8 = vmul.f32 %v1644_v21, %v1382_v20  ;;  %1087 = vtanh.f32 %v550_v47  ;;  %v591_v0 = vadd.f32 %v588_v53, %v572_v33  ;;  %v606_v63 = vadd.f32 %v605_v54, %v603_v42  ;;  %v972_v33 = vld [vmem:[%s1352_s20 + $0xe2] sm:$0xff] }
  0x60   : > { %v602_v61 = vmul.f32 %v1700_v16, %v1388_v24  ;;  %v1086_v1 = vpop.eup %1085  ;;  %v574_v2 = vadd.f32 %v573_v57, %v570_v52  ;;  %v589_v4 = vadd.f32 %v584_v55, %v582_v56  ;;  %v604_v18 = vmul.f32 %v950_v62, %v1392_v28 }
  0x61   : > { %v625_v14 = vmul.f32 %v1651_v29, %v1356_v5  ;;  %929 = vst [vmem:[%s1492_s25 + $0x50] sm:$0xff] %v1086_v1  ;;  %v609_v21 = vadd.f32 %v606_v63, %v591_v0  ;;  %v627_v9 = vmul.f32 %v937_v35, %v1358_v6  ;;  %v629_v15 = vmul.f32 %v959_v59, %v1360_v7 }
  0x62   : > { %v607_v17 = vadd.f32 %v602_v61, %v600_v8  ;;  %v590_v25 = vadd.f32 %v589_v4, %v586_v40  ;;  %v641_v27 = vmul.f32 %v1661_v34, %v1367_v11  ;;  %v643_v22 = vmul.f32 %v943_v23, %v1369_v12  ;;  %v966_v34 = vld [vmem:[%s1352_s20 + $0xe1] sm:$0xff] }
  0x63   : > { %v645_v10 = vmul.f32 %v965_v3, %v1371_v13  ;;  %1089 = vtanh.f32 %v609_v21  ;;  %v631_v36 = vadd.f32 %v627_v9, %v625_v14  ;;  %v659_v35 = vmul.f32 %v1670_v50, %v1382_v20 }
  0x64   : > { %v608_v29 = vadd.f32 %v607_v17, %v604_v18  ;;  %v592_v30 = vadd.f32 %v590_v25, %v574_v2  ;;  %v647_v31 = vadd.f32 %v643_v22, %v641_v27  ;;  %v661_v37 = vmul.f32 %v949_v44, %v1388_v24 }
  0x65   : > { %v663_v32 = vmul.f32 %v971_v19, %v1392_v28  ;;  %v1088_v43 = vpop.eup %1087  ;;  %v632_v23 = vadd.f32 %v631_v36, %v629_v15  ;;  %v626_v39 = vmul.f32 %v1679_v48, %v1356_v5  ;;  %v628_v45 = vmul.f32 %v938_v41, %v1358_v6 }
  0x66   : > { %v630_v26 = vmul.f32 %v960_v38, %v1360_v7  ;;  %930 = vst [vmem:[%s1492_s25 + $0x58] sm:$0xff] %v1088_v43  ;;  %v610_v42 = vadd.f32 %v608_v29, %v592_v30  ;;  %v648_v50 = vadd.f32 %v647_v31, %v645_v10  ;;  %v665_v46 = vadd.f32 %v661_v37, %v659_v35 }
  0x67   : > { %v642_v44 = vmul.f32 %v1689_v60, %v1367_v11  ;;  %v633_v49 = vadd.f32 %v628_v45, %v626_v39  ;;  %v644_v51 = vmul.f32 %v944_v58, %v1369_v12  ;;  %v646_v52 = vmul.f32 %v966_v34, %v1371_v13 }
  0x68   : > { %v660_v5 = vmul.f32 %v1700_v16, %v1382_v20  ;;  %1091 = vtanh.f32 %v610_v42  ;;  %v651_v6 = vadd.f32 %v648_v50, %v632_v23  ;;  %v666_v7 = vadd.f32 %v665_v46, %v663_v32 }
  0x69   : > { %v662_v48 = vmul.f32 %v950_v62, %v1388_v24  ;;  %v1090_v41 = vpop.eup %1089  ;;  %v634_v47 = vadd.f32 %v633_v49, %v630_v26  ;;  %v649_v53 = vadd.f32 %v644_v51, %v642_v44  ;;  %v664_v11 = vmul.f32 %v972_v33, %v1392_v28 }
  0x6a   : > { %951 = vst [vmem:[%s1492_s25 + $0x60] sm:$0xff] %v1090_v41  ;;  %v669_v12 = vadd.f32 %v666_v7, %v651_v6 }
  0x6b   : > { %v667_v13 = vadd.f32 %v662_v48, %v660_v5  ;;  %v650_v60 = vadd.f32 %v649_v53, %v646_v52 }
  0x6c   : > { %1093 = vtanh.f32 %v669_v12 }
  0x6d   : > { %v668_v20 = vadd.f32 %v667_v13, %v664_v11  ;;  %v652_v16 = vadd.f32 %v650_v60, %v634_v47 }
  0x6e   : > { %v1092_v54 = vpop.eup %1091 }
  0x6f   : > { %952 = vst [vmem:[%s1492_s25 + $0x68] sm:$0xff] %v1092_v54  ;;  %v670_v24 = vadd.f32 %v668_v20, %v652_v16 }
  0x71   : > { %1095 = vtanh.f32 %v670_v24 }
  0x72   : > { %v1094_v28 = vpop.eup %1093 }
  0x73   : > { %973 = vst [vmem:[%s1492_s25 + $0x70] sm:$0xff] %v1094_v28 }
  0x77   : > { %v1096_v58 = vpop.eup %1095 }
  0x78   : > { %974 = vst [vmem:[%s1492_s25 + $0x78] sm:$0xff] %v1096_v58 }
  0x79   : > { %1184 = shalt.err (!%p1181_p7)
}
  0x7a   : > { %s1251_s18 = smov 128   ;;  %s1252_s20 = smov 8  }
  0x7b   : > { %991 = dma.vmem_to_hbm [thread:$0]  (%p1308_p4), %s692_s30, 2048, %s694_s3, %s677_s4, %s1251_s18, %s1251_s18, %s1252_s20  }
  0x7c PF: > { %p1008_p9 = scmp.ge.s32.totalorder %s1243_s14, 2  ;;  %s708_s23 = sand.u32 1, %s1223_s9  }
  0x7d   : > { %s709_s24 = scalar_lea.sflag [#allocation4], %s708_s23 }
  0x7e   : > { %p1001_p10 = pnand %p1008_p9, %p1315_p8 }
  0x80   : > { %p1002_p11 = pneg %p1001_p10 }
  0x82   : > { %1218 = dma.done.wait (%p1002_p11), %s709_s24, 2048  }
  0x83   : > { %1220 = vsyncadd (%p1002_p11), %s709_s24, 4294965248  ;;  %s17_s14 = sadd.s32 1, %s1243_s14   ;;  %s1826_s9 = smov %s1227_s10 }
  0x84   : > { %p14_p12 = scmp.ge.s32.totalorder %s17_s14, 4   ;;  %s1827_s10 = smov %s1231_s11 }
  0x85   : > { %s1828_s11 = smov %s1321_s22  ;;  %s1829_s12 = smov %s1239_s13 }
  0x86   : > { %s1830_s13 = smov %s1832_s17  ;;  %16 = sbr.rel (!%p14_p12) target bundleno = 6 (0x6), region = 86 }
  0x8b   :  { %715 = vsyncpa [#allocation3], 1 }
  0x8c   :  { %717 = vsyncpa [#allocation3 + $0x1], 1 }
  0x8d   :  { %718 = vsyncpa [#allocation6], 1 }
  0x8e   :  { %719 = vsyncpa [#allocation4], 1 }
  0x8f   :  { %721 = vsyncpa [#allocation4 + $0x1], 1 }

</bundles_post_ra>
